<compile_context>
chip_gen: v7x
topology: tpu7x:2x2x1
jax: 0.10.0
libtpu: 0.0.40
codegen_flags: <defaults>
</compile_context>

<pallas_src>
import functools

import jax
import jax.numpy as jnp
from jax.experimental import pallas as pl
from jax.experimental.pallas import tpu as pltpu

_LANES = 128
_SUBLANES = 8
_MAX_TM = 8192           # rows per grid block: 8192*128*4B = 4 MiB per f32 input block
_CHUNK_ROWS = 512        # in-kernel accumulation chunk (~256 KiB f32 temps per array)
_SPLIT_MIN_ROWS = 2048   # only split a single block for megacore if each half >= ~1 MiB
_VMEM_LIMIT_BYTES = 32 * 1024 * 1024


def _round_up(x: int, m: int) -> int:
    return ((x + m - 1) // m) * m


def _prediction_err_kernel(p_ref, t_ref, o_ref, *, chunks, tm, rows, needs_mask):
    """Emit one (8,128) f32 partial sum of abs(p-t)/t for this grid block."""

    def block_partial(masked):
        acc = jnp.zeros((_SUBLANES, _LANES), jnp.float32)
        row0 = pl.program_id(0) * tm  # first global row of this block
        for off, cr in chunks:  # static schedule; cr is a multiple of 8
            p = p_ref[off:off + cr, :].astype(jnp.float32)
            t = t_ref[off:off + cr, :].astype(jnp.float32)
            if masked:
                # Last block may run past `rows`; discard garbage rows and use a
                # safe divisor there so no inf/NaN is produced on the kept path.
                rid = jax.lax.broadcasted_iota(jnp.int32, (cr, _LANES), 0)
                valid = (row0 + off + rid) < rows
                t_safe = jnp.where(valid, t, jnp.float32(1.0))
                err = jnp.where(valid, jnp.abs(p - t) / t_safe, jnp.float32(0.0))
            else:
                err = jnp.abs(p - t) / t  # *100/n folded into the final scale
            # (cr,128) -> (cr//8, 8, 128) -> (8,128): leading-axis reduce = pure
            # VPU vector adds; no per-step cross-lane XLU reduce.
            acc = acc + jnp.sum(
                err.reshape(cr // _SUBLANES, _SUBLANES, _LANES), axis=0
            )
        return acc

    if needs_mask:
        last = pl.num_programs(0) - 1

        @pl.when(pl.program_id(0) != last)
        def _():
            o_ref[0] = block_partial(False)

        @pl.when(pl.program_id(0) == last)
        def _():
            o_ref[0] = block_partial(True)
    else:
        o_ref[0] = block_partial(False)


def prediction_err(predict: jax.Array, target: jax.Array) -> jax.Array:
    """mean(abs(predict - target) * 100 / target), computed with a Pallas kernel."""
    assert predict.shape == target.shape
    n = predict.size

    p_flat = predict.reshape(-1)
    t_flat = target.reshape(-1)

    # Rare fallback: only when n is not a multiple of 128 lanes do we pad (with
    # predict = target = 1.0 -> zero error contribution). Aligned inputs (the
    # common case) are consumed in place with zero host-side copies; row-count
    # raggedness is handled by the in-kernel mask on the last block.
    # TODO(synk): n % 128 != 0 still pays one full-array copy; a 1-D-block
    # kernel variant with a flat-element mask would remove it.
    if n % _LANES:
        pad = _LANES - n % _LANES
        p_flat = jnp.concatenate([p_flat, jnp.ones((pad,), p_flat.dtype)])
        t_flat = jnp.concatenate([t_flat, jnp.ones((pad,), t_flat.dtype)])

    rows = p_flat.shape[0] // _LANES
    p2d = p_flat.reshape(rows, _LANES)
    t2d = t_flat.reshape(rows, _LANES)

    # Dtype-aware sublane granularity: 8 (f32) / 16 (bf16) / 32 (int8) so the
    # block shape matches the packed tile layout for sub-32-bit inputs.
    itemsize = jnp.dtype(predict.dtype).itemsize
    sub = _SUBLANES * max(1, 4 // max(1, itemsize))

    # Biggest tile that fits the pipeline budget, rounded to the sublane multiple.
    tm = min(_MAX_TM, _round_up(rows, sub))
    # v7x megacore: guarantee >= 2 grid steps for mid-size inputs so both
    # TensorCores get work (no effect on v5e/v6e, harmless there).
    if tm >= rows and rows >= 2 * _SPLIT_MIN_ROWS:
        tm = _round_up(pl.cdiv(rows, 2), sub)

    num_blocks = pl.cdiv(rows, tm)
    tail_rows = rows - (num_blocks - 1) * tm
    needs_mask = tail_rows != tm  # static: only the last block can be partial

    # Static in-kernel chunk schedule: (row_offset, chunk_rows), rows mult. of 8.
    chunks = []
    off = 0
    while off < tm:
        cr = min(_CHUNK_ROWS, tm - off)
        chunks.append((off, cr))
        off += cr

    kernel = functools.partial(
        _prediction_err_kernel,
        chunks=tuple(chunks),
        tm=tm,
        rows=rows,
        needs_mask=needs_mask,
    )

    partials = pl.pallas_call(
        kernel,
        out_shape=jax.ShapeDtypeStruct((num_blocks, _SUBLANES, _LANES), jnp.float32),
        grid=(num_blocks,),
        in_specs=[
            pl.BlockSpec((tm, _LANES), lambda i: (i, 0)),
            pl.BlockSpec((tm, _LANES), lambda i: (i, 0)),
        ],
        out_specs=pl.BlockSpec((1, _SUBLANES, _LANES), lambda i: (i, 0, 0)),
        compiler_params=pltpu.CompilerParams(
            # Every grid step is independent -> megacore (v7x) splits it freely.
            dimension_semantics=("parallel",),
            # Larger tiles need more than v5e's 16 MiB default scoped VMEM.
            vmem_limit_bytes=_VMEM_LIMIT_BYTES,
        ),
    )(p2d, t2d)

    # Tiny final reduction over (num_blocks, 8, 128) partials; fold in *100/n
    # (n is the ORIGINAL element count; pad/masked rows contribute exactly 0).
    return jnp.sum(partials) * (100.0 / float(n))


def prediction_err_ref(predict, target):
    return jnp.mean(jnp.abs(predict - target) * 100.0 / target)


if __name__ == "__main__":
    key = jax.random.PRNGKey(0)
    k1, k2 = jax.random.split(key)

    # Small shapes consistent with a generic prediction/target pair.
    shape = (2, 4, 16, 16)
    # Keep target away from zero (division by target, as in the PyTorch module).
    target = jax.random.uniform(k1, shape, jnp.float32, minval=0.5, maxval=2.0)
    predict = target + 0.1 * jax.random.normal(k2, shape, jnp.float32)

    err = prediction_err(predict, target)
    jax.block_until_ready(err)

    ref = prediction_err_ref(predict, target)
    assert jnp.allclose(err, ref, rtol=1e-5, atol=1e-5), (err, ref)

    print("KERNEL_OK")
</pallas_src>

<mosaic_0001>
module attributes {stable_mosaic.version = 11 : i64} {
  func.func @_prediction_err_kernel(%arg0: i32, %arg1: memref<16x128xf32, #tpu.memory_space<vmem>>, %arg2: memref<16x128xf32, #tpu.memory_space<vmem>>, %arg3: memref<1x8x128xf32, #tpu.memory_space<vmem>>) attributes {dimension_semantics = [#tpu.dimension_semantics<parallel>], iteration_bounds = array<i64: 1>, scalar_prefetch = 0 : i64, scratch_operands = 0 : i64, tpu.core_type = #tpu.core_type<tc>, window_params = [{transform_indices = @transform_0, window_bounds = array<i64: 16, 128>}, {transform_indices = @transform_1, window_bounds = array<i64: 16, 128>}, {transform_indices = @transform_2, window_bounds = array<i64: 1, 8, 128>}]} {
    %cst = arith.constant 0.000000e+00 : f32
    %0 = vector.broadcast %cst : f32 to vector<8x128xf32>
    %c0 = arith.constant 0 : index
    %c0_0 = arith.constant 0 : index
    %1 = vector.load %arg1[%c0, %c0_0] : memref<16x128xf32, #tpu.memory_space<vmem>>, vector<16x128xf32>
    %c0_1 = arith.constant 0 : index
    %c0_2 = arith.constant 0 : index
    %2 = vector.load %arg2[%c0_1, %c0_2] : memref<16x128xf32, #tpu.memory_space<vmem>>, vector<16x128xf32>
    %3 = arith.subf %1, %2 : vector<16x128xf32>
    %4 = math.absf %3 : vector<16x128xf32>
    %5 = arith.divf %4, %2 : vector<16x128xf32>
    %6 = vector.shape_cast %5 : vector<16x128xf32> to vector<2x8x128xf32>
    %cst_3 = arith.constant dense<0.000000e+00> : vector<8x128xf32>
    %7 = vector.multi_reduction <add>, %6, %cst_3 [0] : vector<2x8x128xf32> to vector<8x128xf32>
    %8 = arith.addf %0, %7 : vector<8x128xf32>
    %c0_4 = arith.constant 0 : index
    %c0_5 = arith.constant 0 : index
    %c0_6 = arith.constant 0 : index
    %9 = vector.load %arg3[%c0_4, %c0_5, %c0_6] : memref<1x8x128xf32, #tpu.memory_space<vmem>>, vector<1x8x128xf32>
    %10 = vector.shape_cast %9 : vector<1x8x128xf32> to vector<8x128xf32>
    %11 = vector.shape_cast %8 : vector<8x128xf32> to vector<1x8x128xf32>
    tpu.vector_store %arg3[%c0_4, %c0_5, %c0_6], %11 {strides = array<i32>} : memref<1x8x128xf32, #tpu.memory_space<vmem>>, vector<1x8x128xf32>,
    return
  }
  func.func @transform_0(%arg0: i32) -> (i32, i32) {
    %c0_i32 = arith.constant 0 : i32
    %c0_i32_0 = arith.constant 0 : i32
    return %arg0, %c0_i32 : i32, i32
  }
  func.func @transform_1(%arg0: i32) -> (i32, i32) {
    %c0_i32 = arith.constant 0 : i32
    %c0_i32_0 = arith.constant 0 : i32
    return %arg0, %c0_i32 : i32, i32
  }
  func.func @transform_2(%arg0: i32) -> (i32, i32, i32) {
    %c0_i32 = arith.constant 0 : i32
    %c0_i32_0 = arith.constant 0 : i32
    %c0_i32_1 = arith.constant 0 : i32
    return %arg0, %c0_i32, %c0_i32_0 : i32, i32, i32
  }
}

</mosaic_0001>

<bundles_post_ra>
// kernel: tpu_custom_call.1
= control target key start
LH: loop header
LB: loop body
LE: loop exit
PB: predicated region body
PF: predicated region fallthrough
CT: control target
= control target key end

     0   :  { %7 = vsyncpa [#allocation3], 0  ;;  %s208_s0 = inlined_call_operand.hbm [shape: f32[16,128], index: 0, kind: input, shape index: {}]   ;;  %s209_s1 = inlined_call_operand.hbm [shape: f32[16,128], index: 1, kind: input, shape index: {}]   ;;  %s210_s2 = inlined_call_operand.hbm [shape: f32[1,8,128], index: 2, kind: output, shape index: {}]  }
   0x1   :  { %8 = vsyncpa [#allocation6], 0 }
   0x2   :  { %9 = vsyncpa [#allocation4], 0  ;;  %s152_s9 = smov [#allocation2]   ;;  %s80_s13 = scalar_lea.hbm %s208_s0, 256 }
   0x3   :  { %s15_s10 = sshll.u32 %s152_s9, 4  ;;  %p81_p0 = scmp.ne.s32.totalorder %s208_s0, %s80_s13  ;;  %s16_s10 = int_to_ptr.vmem [resolvable:$true] %s15_s10 }
   0x4   :  { %p84_p1 = scmp.lt.u32.totalorder %s80_s13, %s208_s0 }
   0x6   :  { %p86_p2 = pnand %p84_p1, %p81_p0 }
   0x8   :  { %89 = shalt.err (!%p86_p2)
}
   0x9   :  { %s90_s18 = scalar_lea.vmem %s16_s10, 256  ;;  %p95_p4 = scmp.lt.s32.totalorder %s16_s10, %s16_s10 }
   0xa   :  { %p91_p3 = scmp.ne.s32.totalorder %s16_s10, %s90_s18  ;;  %p96_p5 = scmp.lt.s32.totalorder %s90_s18, %s90_s18 }
   0xc   :  { %p97_p6 = por %p96_p5, %p95_p4 }
   0xe   :  { %p98_p7 = pnand %p97_p6, %p91_p3 }
  0x10   :  { %101 = shalt.err (!%p98_p7)
}
  0x11   :  { %s153_s19 = smov 128   ;;  %s154_s20 = smov 8  }
  0x12   :  { %21 = dma.hbm_to_vmem [thread:$0]  %s208_s0, 256, %s16_s10, [#allocation3], %s153_s19, %s153_s19, %s154_s20  }
  0x13   :  { %s155_s23 = smov [#allocation5]   ;;  %s102_s27 = scalar_lea.hbm %s209_s1, 256 }
  0x14   :  { %s27_s24 = sshll.u32 %s155_s23, 4  ;;  %p103_p8 = scmp.ne.s32.totalorder %s209_s1, %s102_s27  ;;  %s28_s24 = int_to_ptr.vmem [resolvable:$true] %s27_s24 }
  0x15   :  { %p106_p9 = scmp.lt.u32.totalorder %s102_s27, %s209_s1 }
  0x17   :  { %p108_p10 = pnand %p106_p9, %p103_p8 }
  0x19   :  { %111 = shalt.err (!%p108_p10)
}
  0x1a   :  { %s112_s4 = scalar_lea.vmem %s28_s24, 256  ;;  %p117_p12 = scmp.lt.s32.totalorder %s28_s24, %s28_s24 }
  0x1b   :  { %p113_p11 = scmp.ne.s32.totalorder %s28_s24, %s112_s4  ;;  %p118_p13 = scmp.lt.s32.totalorder %s112_s4, %s112_s4 }
  0x1d   :  { %p119_p0 = por %p118_p13, %p117_p12 }
  0x1f   :  { %p120_p1 = pnand %p119_p0, %p113_p11 }
  0x21   :  { %123 = shalt.err (!%p120_p1)
}
  0x22   :  { %33 = dma.hbm_to_vmem [thread:$0]  %s209_s1, 256, %s28_s24, [#allocation6], %s153_s19, %s153_s19, %s154_s20  }
  0x23   :  { %146 = dma.done.wait [#allocation3], 256  }
  0x24   :  { %147 = vsyncadd [#allocation3], 4294967040 }
  0x25   :  { %148 = dma.done.wait [#allocation6], 256  }
  0x26   :  { %149 = vsyncadd [#allocation6], 4294967040  ;;  %v42_v0 = vld [vmem:[#allocation5] sm:$0xff]  ;;  %v40_v1 = vld [vmem:[#allocation2] sm:$0xff]  ;;  %s156_s6 = smov [#allocation7]  }
  0x27   :  { %v43_v2 = vld [vmem:[#allocation5 + $0x8] sm:$0xff]  ;;  %76 = vrcp.f32 %v42_v0  ;;  %v41_v3 = vld [vmem:[#allocation2 + $0x8] sm:$0xff]  ;;  %v44_v4 = vsub.f32 %v40_v1, %v42_v0  ;;  %s61_s7 = sshll.u32 %s156_s6, 4  ;;  %s62_s7 = int_to_ptr.vmem [resolvable:$true] %s61_s7 }
  0x28   :  { %78 = vrcp.f32 %v43_v2  ;;  %v45_v5 = vsub.f32 %v41_v3, %v43_v2  ;;  %s124_s1 = scalar_lea.vmem %s62_s7, 128  ;;  %p129_p3 = scmp.lt.s32.totalorder %s62_s7, %s62_s7 }
  0x29   :  { %v46_v6 = vand.u32 2147483647, %v44_v4  ;;  %p125_p2 = scmp.ne.s32.totalorder %s62_s7, %s124_s1  ;;  %p130_p4 = scmp.lt.s32.totalorder %s124_s1, %s124_s1 }
  0x2a   :  { %v47_v7 = vand.u32 2147483647, %v45_v5 }
  0x2b   :  { %p131_p5 = por %p130_p4, %p129_p3 }
  0x2d   :  { %p132_p6 = pnand %p131_p5, %p125_p2 }
  0x31   :  { %v77_v8 = vpop.eup %76 }
  0x32   :  { %v79_v9 = vpop.eup %78  ;;  %v49_v10 = vmul.f32 %v77_v8, %v46_v6 }
  0x33   :  { %v51_v11 = vmul.f32 %v79_v9, %v47_v7 }
  0x35   :  { %v52_v12 = vadd.f32 %v51_v11, %v49_v10 }
  0x37   :  { %54 = vst [vmem:[#allocation7] sm:$0xff] %v52_v12 }
  0x38   :  { %135 = shalt.err (!%p132_p6)
}
  0x39   :  { %s136_s10 = scalar_lea.hbm %s210_s2, 128 }
  0x3a   :  { %p137_p7 = scmp.ne.s32.totalorder %s210_s2, %s136_s10  ;;  %p140_p8 = scmp.lt.u32.totalorder %s136_s10, %s210_s2 }
  0x3c   :  { %p142_p9 = pnand %p140_p8, %p137_p7 }
  0x3e   :  { %145 = shalt.err (!%p142_p9)
}
  0x3f   :  { %64 = dma.vmem_to_hbm [thread:$0]  %s62_s7, 128, %s210_s2, [#allocation4]  }
  0x40   :  { %150 = dma.done.wait [#allocation4], 128  }
  0x41   :  { %151 = vsyncadd [#allocation4], 4294967168 }
  0x42   :  { %68 = vsyncpa [#allocation3], 1 }
  0x43   :  { %69 = vsyncpa [#allocation6], 1 }
  0x44   :  { %70 = vsyncpa [#allocation4], 1 }

</bundles_post_ra>
